<compile_context>
chip_gen: v5e
topology: v5e:2x2
jax: 0.10.0
libtpu: 0.0.40
codegen_flags: <defaults>
</compile_context>

<pallas_src>
import functools

import jax
import jax.numpy as jnp
from jax.experimental import pallas as pl
from jax.experimental.pallas import tpu as pltpu

BN_EPS = 1e-5


def _mlp(h, w1, b1, gamma, beta, w2, b2):
    """Linear -> BatchNorm1d (training-mode batch stats) -> ReLU -> Linear, f32."""
    h1 = jnp.dot(h, w1, preferred_element_type=jnp.float32) + b1      # (B, H)
    mu = jnp.mean(h1, axis=0, keepdims=True)
    d = h1 - mu
    var = jnp.mean(d * d, axis=0, keepdims=True)                      # biased, two-pass
    h1 = d * jax.lax.rsqrt(var + BN_EPS) * gamma + beta
    h1 = jnp.maximum(h1, 0.0)
    return jnp.dot(h1, w2, preferred_element_type=jnp.float32) + b2


def repnet_kernel(
    x_ref,                                   # (B, C, tS) f32 (spatial tile, lanes = S)
    cw_ref, cb_ref,                          # encoder 1x1 conv: (E, C) f32, (E, 1) f32
    pw1_ref, pb1_ref, pg1_ref, pbt1_ref,     # projection fc1 / bn1
    pw2_ref, pb2_ref,                        # projection fc2
    qw1_ref, qb1_ref, qg1_ref, qbt1_ref,     # prediction fc1 / bn1
    qw2_ref, qb2_ref,                        # prediction fc2
    o_ref,                                   # (B, P) f32
    acc_ref,                                 # (B, E) f32 scratch: spatial sum
    *, s_total, needs_mask,
):
    step = pl.program_id(0)
    nsteps = pl.num_programs(0)

    @pl.when(step == 0)
    def _init():
        acc_ref[...] = jnp.zeros_like(acc_ref)

    B, C, tS = x_ref.shape
    E = cw_ref.shape[0]

    x = x_ref[...]                           # (B, C, tS) f32
    w = cw_ref[...]                          # (E, C)     f32
    bias = cb_ref[...]                       # (E, 1)     f32

    # ---- encoder tile: 1x1 conv as VPU broadcast-FMA over the lane-dense S axis ----
    h = jnp.zeros((B, E, tS), jnp.float32)
    for c in range(C):                       # static unroll; C is tiny for a 1x1 conv
        h = h + w[:, c:c + 1][None, :, :] * x[:, c:c + 1, :]
    h = jnp.maximum(h + bias[None, :, :], 0.0)

    if needs_mask:                           # static: only emitted for a short last tile
        lane = jax.lax.broadcasted_iota(jnp.int32, (1, 1, tS), 2)
        valid = (step * tS + lane) < s_total
        h = jnp.where(valid, h, 0.0)

    # per-batch spatial partial sum (global avg-pool's 1/S applied in the tail)
    acc_ref[...] += jnp.sum(h, axis=2)

    # ---- BN + projection MLP + prediction MLP (once, on the last tile) ----
    @pl.when(step == nsteps - 1)
    def _tail():
        feat = acc_ref[...] * jnp.float32(1.0 / s_total)               # (B, E) pooled
        z = _mlp(feat,
                 pw1_ref[...], pb1_ref[...], pg1_ref[...], pbt1_ref[...],
                 pw2_ref[...], pb2_ref[...])
        y = _mlp(z,
                 qw1_ref[...], qb1_ref[...], qg1_ref[...], qbt1_ref[...],
                 qw2_ref[...], qb2_ref[...])
        o_ref[...] = y.astype(o_ref.dtype)


def _pick_s_tile(B, C, E, S, vmem_budget_bytes=8 * 1024 * 1024):
    """Lane-aligned spatial tile sized so 2x x-buffers + conv intermediate fit budget."""
    if S <= 128:
        return S
    c_pad = max(8, ((C + 7) // 8) * 8)                 # sublane padding of the x block
    per_lane_bytes = (2 * B * c_pad + B * E) * 4       # 2 x-buffers + (B,E,tS) f32
    t = max(128, (vmem_budget_bytes // per_lane_bytes) // 128 * 128)
    t = min(t, 4096)
    t = min(t, ((S + 127) // 128) * 128)
    return t


def repnet_forward(x_nchw, params, *, s_tile=None):
    """x_nchw: (B, C, H, W) float32 (PyTorch layout). Returns (B, proj_size) f32."""
    B, C, H, W = x_nchw.shape
    S = H * W
    E = params["conv_w"].shape[0]            # encoder feature dim == proj_size
    Hd = params["proj_w1"].shape[1]
    P = params["proj_w2"].shape[1]

    # Native NCHW layout, spatial flattened: a free view, no HBM transpose/cast pass.
    x = x_nchw.reshape(B, C, S)

    if s_tile is None:
        s_tile = _pick_s_tile(B, C, E, S)
    if s_tile >= S:
        s_tile = S                            # single full-extent block (no mask needed)
        n_tiles = 1
    else:
        s_tile = max(128, (s_tile // 128) * 128)   # lane-aligned tile
        n_tiles = pl.cdiv(S, s_tile)
    needs_mask = (n_tiles * s_tile) != S

    weights = (
        params["conv_w"], params["conv_b"],
        params["proj_w1"], params["proj_b1"], params["proj_g1"], params["proj_bt1"],
        params["proj_w2"], params["proj_b2"],
        params["pred_w1"], params["pred_b1"], params["pred_g1"], params["pred_bt1"],
        params["pred_w2"], params["pred_b2"],
    )

    x_spec = pl.BlockSpec((B, C, s_tile), lambda s: (0, 0, s))
    const2d = lambda a: pl.BlockSpec(a.shape, lambda s: (0, 0))   # VMEM-resident weights
    in_specs = [x_spec] + [const2d(w) for w in weights]
    out_spec = pl.BlockSpec((B, P), lambda s: (0, 0))

    kernel = functools.partial(repnet_kernel, s_total=S, needs_mask=needs_mask)

    flops = 2 * B * S * C * E + 2 * (2 * B * E * Hd + 2 * B * Hd * P)
    bytes_accessed = (x.size * x.dtype.itemsize
                      + sum(int(w.size) * w.dtype.itemsize for w in weights)
                      + B * P * 4)

    return pl.pallas_call(
        kernel,
        out_shape=jax.ShapeDtypeStruct((B, P), jnp.float32),
        grid_spec=pltpu.PrefetchScalarGridSpec(
            num_scalar_prefetch=0,
            grid=(n_tiles,),
            in_specs=in_specs,
            out_specs=out_spec,
            scratch_shapes=[pltpu.VMEM((B, E), jnp.float32)],
        ),
        compiler_params=pltpu.CompilerParams(
            dimension_semantics=("arbitrary",),   # spatial axis is a reduction
            vmem_limit_bytes=32 * 1024 * 1024,    # safe on v5e/v6e/v7x scoped VMEM
        ),
        cost_estimate=pl.CostEstimate(
            flops=flops, transcendentals=0, bytes_accessed=bytes_accessed),
    )(x, *weights)


def init_params(key, in_ch, proj_size, hidden_size):
    ks = jax.random.split(key, 8)
    scale = 0.05

    def w(k, shape):
        return (scale * jax.random.normal(k, shape)).astype(jnp.float32)

    return {
        # encoder: 1x1 conv  (C -> proj_size), stored (E, C) / (E, 1)
        "conv_w": w(ks[0], (proj_size, in_ch)),
        "conv_b": w(ks[1], (proj_size, 1)),
        # projection MLP: Linear(P,H) -> BN(H) -> ReLU -> Linear(H,P)
        "proj_w1": w(ks[2], (proj_size, hidden_size)),
        "proj_b1": w(ks[3], (1, hidden_size)),
        "proj_g1": jnp.ones((1, hidden_size), jnp.float32),
        "proj_bt1": jnp.zeros((1, hidden_size), jnp.float32),
        "proj_w2": w(ks[4], (hidden_size, proj_size)),
        "proj_b2": w(ks[5], (1, proj_size)),
        # prediction MLP
        "pred_w1": w(ks[6], (proj_size, hidden_size)),
        "pred_b1": w(ks[7], (1, hidden_size)),
        "pred_g1": jnp.ones((1, hidden_size), jnp.float32),
        "pred_bt1": jnp.zeros((1, hidden_size), jnp.float32),
        "pred_w2": w(jax.random.fold_in(key, 100), (hidden_size, proj_size)),
        "pred_b2": w(jax.random.fold_in(key, 101), (1, proj_size)),
    }


if __name__ == "__main__":
    key = jax.random.PRNGKey(0)
    B, C, H, W = 2, 4, 16, 16
    PROJ, HIDDEN = 32, 32

    kx, kp = jax.random.split(key)
    x_nchw = jax.random.normal(kx, (B, C, H, W), dtype=jnp.float32)  # PyTorch NCHW
    params = init_params(kp, C, PROJ, HIDDEN)

    # s_tile=128 -> 2 grid steps over S=256 to exercise the spatial-sum pipeline.
    out = repnet_forward(x_nchw, params, s_tile=128)
    out = jax.block_until_ready(out)
    assert out.shape == (B, PROJ)
    print("KERNEL_OK")
</pallas_src>

<mosaic_0001>
module attributes {stable_mosaic.version = 11 : i64} {
  func.func @repnet_kernel(%arg0: i32, %arg1: memref<2x4x128xf32, #tpu.memory_space<vmem>>, %arg2: memref<32x4xf32, #tpu.memory_space<vmem>>, %arg3: memref<32x1xf32, #tpu.memory_space<vmem>>, %arg4: memref<32x32xf32, #tpu.memory_space<vmem>>, %arg5: memref<1x32xf32, #tpu.memory_space<vmem>>, %arg6: memref<1x32xf32, #tpu.memory_space<vmem>>, %arg7: memref<1x32xf32, #tpu.memory_space<vmem>>, %arg8: memref<32x32xf32, #tpu.memory_space<vmem>>, %arg9: memref<1x32xf32, #tpu.memory_space<vmem>>, %arg10: memref<32x32xf32, #tpu.memory_space<vmem>>, %arg11: memref<1x32xf32, #tpu.memory_space<vmem>>, %arg12: memref<1x32xf32, #tpu.memory_space<vmem>>, %arg13: memref<1x32xf32, #tpu.memory_space<vmem>>, %arg14: memref<32x32xf32, #tpu.memory_space<vmem>>, %arg15: memref<1x32xf32, #tpu.memory_space<vmem>>, %arg16: memref<2x32xf32, #tpu.memory_space<vmem>>, %arg17: memref<2x32xf32, #tpu.memory_space<vmem>>) attributes {dimension_semantics = [#tpu.dimension_semantics<arbitrary>], iteration_bounds = array<i64: 2>, scalar_prefetch = 0 : i64, scratch_operands = 1 : i64, tpu.core_type = #tpu.core_type<tc>, window_params = [{transform_indices = @transform_0, window_bounds = array<i64: 2, 4, 128>}, {pipeline_mode = #tpu.pipeline_mode<synchronous>, transform_indices = @transform_1, window_bounds = array<i64: 32, 4>}, {pipeline_mode = #tpu.pipeline_mode<synchronous>, transform_indices = @transform_2, window_bounds = array<i64: 32, 1>}, {pipeline_mode = #tpu.pipeline_mode<synchronous>, transform_indices = @transform_3, window_bounds = array<i64: 32, 32>}, {pipeline_mode = #tpu.pipeline_mode<synchronous>, transform_indices = @transform_4, window_bounds = array<i64: 1, 32>}, {pipeline_mode = #tpu.pipeline_mode<synchronous>, transform_indices = @transform_5, window_bounds = array<i64: 1, 32>}, {pipeline_mode = #tpu.pipeline_mode<synchronous>, transform_indices = @transform_6, window_bounds = array<i64: 1, 32>}, {pipeline_mode = #tpu.pipeline_mode<synchronous>, transform_indices = @transform_7, window_bounds = array<i64: 32, 32>}, {pipeline_mode = #tpu.pipeline_mode<synchronous>, transform_indices = @transform_8, window_bounds = array<i64: 1, 32>}, {pipeline_mode = #tpu.pipeline_mode<synchronous>, transform_indices = @transform_9, window_bounds = array<i64: 32, 32>}, {pipeline_mode = #tpu.pipeline_mode<synchronous>, transform_indices = @transform_10, window_bounds = array<i64: 1, 32>}, {pipeline_mode = #tpu.pipeline_mode<synchronous>, transform_indices = @transform_11, window_bounds = array<i64: 1, 32>}, {pipeline_mode = #tpu.pipeline_mode<synchronous>, transform_indices = @transform_12, window_bounds = array<i64: 1, 32>}, {pipeline_mode = #tpu.pipeline_mode<synchronous>, transform_indices = @transform_13, window_bounds = array<i64: 32, 32>}, {pipeline_mode = #tpu.pipeline_mode<synchronous>, transform_indices = @transform_14, window_bounds = array<i64: 1, 32>}, {pipeline_mode = #tpu.pipeline_mode<synchronous>, transform_indices = @transform_15, window_bounds = array<i64: 2, 32>}]} {
    %c0_i32 = arith.constant 0 : i32
    %0 = arith.cmpi eq, %arg0, %c0_i32 : i32
    %1 = arith.extui %0 : i1 to i32
    %c0_i32_0 = arith.constant 0 : i32
    %2 = arith.cmpi ne, %1, %c0_i32_0 : i32
    scf.if %2 {
      %cst_14 = arith.constant 0.000000e+00 : f32
      %47 = vector.broadcast %cst_14 : f32 to vector<2x32xf32>
      %c0_15 = arith.constant 0 : index
      %c0_16 = arith.constant 0 : index
      %48 = vector.load %arg17[%c0_15, %c0_16] : memref<2x32xf32, #tpu.memory_space<vmem>>, vector<2x32xf32>
      tpu.vector_store %arg17[%c0_15, %c0_16], %47 {strides = array<i32>} : memref<2x32xf32, #tpu.memory_space<vmem>>, vector<2x32xf32>,
    } else {
    }
    %c0 = arith.constant 0 : index
    %c0_1 = arith.constant 0 : index
    %c0_2 = arith.constant 0 : index
    %3 = vector.load %arg1[%c0, %c0_1, %c0_2] : memref<2x4x128xf32, #tpu.memory_space<vmem>>, vector<2x4x128xf32>
    %c0_3 = arith.constant 0 : index
    %c0_4 = arith.constant 0 : index
    %4 = vector.load %arg2[%c0_3, %c0_4] : memref<32x4xf32, #tpu.memory_space<vmem>>, vector<32x4xf32>
    %c0_5 = arith.constant 0 : index
    %c0_6 = arith.constant 0 : index
    %5 = vector.load %arg3[%c0_5, %c0_6] : memref<32x1xf32, #tpu.memory_space<vmem>>, vector<32x1xf32>
    %cst = arith.constant 0.000000e+00 : f32
    %6 = vector.broadcast %cst : f32 to vector<2x32x128xf32>
    %7 = vector.extract_strided_slice %4 {offsets = [0, 0], sizes = [32, 1], strides = [1, 1]} : vector<32x4xf32> to vector<32x1xf32>
    %8 = vector.shape_cast %7 : vector<32x1xf32> to vector<1x32x1xf32>
    %9 = vector.extract_strided_slice %3 {offsets = [0, 0, 0], sizes = [2, 1, 128], strides = [1, 1, 1]} : vector<2x4x128xf32> to vector<2x1x128xf32>
    %10 = vector.broadcast %8 : vector<1x32x1xf32> to vector<2x32x128xf32>
    %11 = vector.broadcast %9 : vector<2x1x128xf32> to vector<2x32x128xf32>
    %12 = arith.mulf %10, %11 : vector<2x32x128xf32>
    %13 = arith.addf %6, %12 : vector<2x32x128xf32>
    %14 = vector.extract_strided_slice %4 {offsets = [0, 1], sizes = [32, 1], strides = [1, 1]} : vector<32x4xf32> to vector<32x1xf32>
    %15 = vector.shape_cast %14 : vector<32x1xf32> to vector<1x32x1xf32>
    %16 = vector.extract_strided_slice %3 {offsets = [0, 1, 0], sizes = [2, 1, 128], strides = [1, 1, 1]} : vector<2x4x128xf32> to vector<2x1x128xf32>
    %17 = vector.broadcast %15 : vector<1x32x1xf32> to vector<2x32x128xf32>
    %18 = vector.broadcast %16 : vector<2x1x128xf32> to vector<2x32x128xf32>
    %19 = arith.mulf %17, %18 : vector<2x32x128xf32>
    %20 = arith.addf %13, %19 : vector<2x32x128xf32>
    %21 = vector.extract_strided_slice %4 {offsets = [0, 2], sizes = [32, 1], strides = [1, 1]} : vector<32x4xf32> to vector<32x1xf32>
    %22 = vector.shape_cast %21 : vector<32x1xf32> to vector<1x32x1xf32>
    %23 = vector.extract_strided_slice %3 {offsets = [0, 2, 0], sizes = [2, 1, 128], strides = [1, 1, 1]} : vector<2x4x128xf32> to vector<2x1x128xf32>
    %24 = vector.broadcast %22 : vector<1x32x1xf32> to vector<2x32x128xf32>
    %25 = vector.broadcast %23 : vector<2x1x128xf32> to vector<2x32x128xf32>
    %26 = arith.mulf %24, %25 : vector<2x32x128xf32>
    %27 = arith.addf %20, %26 : vector<2x32x128xf32>
    %28 = vector.extract_strided_slice %4 {offsets = [0, 3], sizes = [32, 1], strides = [1, 1]} : vector<32x4xf32> to vector<32x1xf32>
    %29 = vector.shape_cast %28 : vector<32x1xf32> to vector<1x32x1xf32>
    %30 = vector.extract_strided_slice %3 {offsets = [0, 3, 0], sizes = [2, 1, 128], strides = [1, 1, 1]} : vector<2x4x128xf32> to vector<2x1x128xf32>
    %31 = vector.broadcast %29 : vector<1x32x1xf32> to vector<2x32x128xf32>
    %32 = vector.broadcast %30 : vector<2x1x128xf32> to vector<2x32x128xf32>
    %33 = arith.mulf %31, %32 : vector<2x32x128xf32>
    %34 = arith.addf %27, %33 : vector<2x32x128xf32>
    %35 = vector.shape_cast %5 : vector<32x1xf32> to vector<1x32x1xf32>
    %36 = vector.broadcast %35 : vector<1x32x1xf32> to vector<2x32x128xf32>
    %37 = arith.addf %34, %36 : vector<2x32x128xf32>
    %cst_7 = arith.constant 0.000000e+00 : f32
    %38 = vector.broadcast %cst_7 : f32 to vector<2x32x128xf32>
    %39 = arith.maximumf %37, %38 : vector<2x32x128xf32>
    %c0_8 = arith.constant 0 : index
    %c0_9 = arith.constant 0 : index
    %40 = vector.load %arg17[%c0_8, %c0_9] : memref<2x32xf32, #tpu.memory_space<vmem>>, vector<2x32xf32>
    %cst_10 = arith.constant dense<0.000000e+00> : vector<2x32xf32>
    %41 = vector.multi_reduction <add>, %39, %cst_10 [2] : vector<2x32x128xf32> to vector<2x32xf32>
    %42 = arith.addf %40, %41 : vector<2x32xf32>
    %c0_11 = arith.constant 0 : index
    %c0_12 = arith.constant 0 : index
    %43 = vector.load %arg17[%c0_11, %c0_12] : memref<2x32xf32, #tpu.memory_space<vmem>>, vector<2x32xf32>
    tpu.vector_store %arg17[%c0_11, %c0_12], %42 {strides = array<i32>} : memref<2x32xf32, #tpu.memory_space<vmem>>, vector<2x32xf32>,
    %c1_i32 = arith.constant 1 : i32
    %44 = arith.cmpi eq, %arg0, %c1_i32 : i32
    %45 = arith.extui %44 : i1 to i32
    %c0_i32_13 = arith.constant 0 : i32
    %46 = arith.cmpi ne, %45, %c0_i32_13 : i32
    scf.if %46 {
      %c0_14 = arith.constant 0 : index
      %c0_15 = arith.constant 0 : index
      %47 = vector.load %arg17[%c0_14, %c0_15] : memref<2x32xf32, #tpu.memory_space<vmem>>, vector<2x32xf32>
      %cst_16 = arith.constant 3.906250e-03 : f32
      %48 = vector.broadcast %cst_16 : f32 to vector<2x32xf32>
      %49 = arith.mulf %47, %48 : vector<2x32xf32>
      %c0_17 = arith.constant 0 : index
      %c0_18 = arith.constant 0 : index
      %50 = vector.load %arg4[%c0_17, %c0_18] : memref<32x32xf32, #tpu.memory_space<vmem>>, vector<32x32xf32>
      %c0_19 = arith.constant 0 : index
      %c0_20 = arith.constant 0 : index
      %51 = vector.load %arg5[%c0_19, %c0_20] : memref<1x32xf32, #tpu.memory_space<vmem>>, vector<1x32xf32>
      %c0_21 = arith.constant 0 : index
      %c0_22 = arith.constant 0 : index
      %52 = vector.load %arg6[%c0_21, %c0_22] : memref<1x32xf32, #tpu.memory_space<vmem>>, vector<1x32xf32>
      %c0_23 = arith.constant 0 : index
      %c0_24 = arith.constant 0 : index
      %53 = vector.load %arg7[%c0_23, %c0_24] : memref<1x32xf32, #tpu.memory_space<vmem>>, vector<1x32xf32>
      %c0_25 = arith.constant 0 : index
      %c0_26 = arith.constant 0 : index
      %54 = vector.load %arg8[%c0_25, %c0_26] : memref<32x32xf32, #tpu.memory_space<vmem>>, vector<32x32xf32>
      %c0_27 = arith.constant 0 : index
      %c0_28 = arith.constant 0 : index
      %55 = vector.load %arg9[%c0_27, %c0_28] : memref<1x32xf32, #tpu.memory_space<vmem>>, vector<1x32xf32>
      %cst_29 = arith.constant dense<0.000000e+00> : vector<2x32xf32>
      %56 = tpu.matmul %49, %50, %cst_29 {dimension_numbers = #tpu.dot_dimension_numbers<[1], [0], [0], [1], [0, 0, 1, 1], [], []>} : vector<2x32xf32>, vector<32x32xf32>, vector<2x32xf32> -> vector<2x32xf32>
      %57 = vector.broadcast %51 : vector<1x32xf32> to vector<2x32xf32>
      %58 = arith.addf %56, %57 : vector<2x32xf32>
      %cst_30 = arith.constant dense<0.000000e+00> : vector<32xf32>
      %59 = vector.multi_reduction <add>, %58, %cst_30 [0] : vector<2x32xf32> to vector<32xf32>
      %60 = vector.shape_cast %59 : vector<32xf32> to vector<1x32xf32>
      %cst_31 = arith.constant 2.000000e+00 : f32
      %61 = vector.broadcast %cst_31 : f32 to vector<1x32xf32>
      %62 = arith.divf %60, %61 : vector<1x32xf32>
      %63 = vector.broadcast %62 : vector<1x32xf32> to vector<2x32xf32>
      %64 = arith.subf %58, %63 : vector<2x32xf32>
      %65 = arith.mulf %64, %64 : vector<2x32xf32>
      %cst_32 = arith.constant dense<0.000000e+00> : vector<32xf32>
      %66 = vector.multi_reduction <add>, %65, %cst_32 [0] : vector<2x32xf32> to vector<32xf32>
      %67 = vector.shape_cast %66 : vector<32xf32> to vector<1x32xf32>
      %cst_33 = arith.constant 2.000000e+00 : f32
      %68 = vector.broadcast %cst_33 : f32 to vector<1x32xf32>
      %69 = arith.divf %67, %68 : vector<1x32xf32>
      %cst_34 = arith.constant 9.99999974E-6 : f32
      %70 = vector.broadcast %cst_34 : f32 to vector<1x32xf32>
      %71 = arith.addf %69, %70 : vector<1x32xf32>
      %72 = math.rsqrt %71 : vector<1x32xf32>
      %73 = vector.broadcast %72 : vector<1x32xf32> to vector<2x32xf32>
      %74 = arith.mulf %64, %73 : vector<2x32xf32>
      %75 = vector.broadcast %52 : vector<1x32xf32> to vector<2x32xf32>
      %76 = arith.mulf %74, %75 : vector<2x32xf32>
      %77 = vector.broadcast %53 : vector<1x32xf32> to vector<2x32xf32>
      %78 = arith.addf %76, %77 : vector<2x32xf32>
      %cst_35 = arith.constant 0.000000e+00 : f32
      %79 = vector.broadcast %cst_35 : f32 to vector<2x32xf32>
      %80 = arith.maximumf %78, %79 : vector<2x32xf32>
      %cst_36 = arith.constant dense<0.000000e+00> : vector<2x32xf32>
      %81 = tpu.matmul %80, %54, %cst_36 {dimension_numbers = #tpu.dot_dimension_numbers<[1], [0], [0], [1], [0, 0, 1, 1], [], []>} : vector<2x32xf32>, vector<32x32xf32>, vector<2x32xf32> -> vector<2x32xf32>
      %82 = vector.broadcast %55 : vector<1x32xf32> to vector<2x32xf32>
      %83 = arith.addf %81, %82 : vector<2x32xf32>
      %c0_37 = arith.constant 0 : index
      %c0_38 = arith.constant 0 : index
      %84 = vector.load %arg10[%c0_37, %c0_38] : memref<32x32xf32, #tpu.memory_space<vmem>>, vector<32x32xf32>
      %c0_39 = arith.constant 0 : index
      %c0_40 = arith.constant 0 : index
      %85 = vector.load %arg11[%c0_39, %c0_40] : memref<1x32xf32, #tpu.memory_space<vmem>>, vector<1x32xf32>
      %c0_41 = arith.constant 0 : index
      %c0_42 = arith.constant 0 : index
      %86 = vector.load %arg12[%c0_41, %c0_42] : memref<1x32xf32, #tpu.memory_space<vmem>>, vector<1x32xf32>
      %c0_43 = arith.constant 0 : index
      %c0_44 = arith.constant 0 : index
      %87 = vector.load %arg13[%c0_43, %c0_44] : memref<1x32xf32, #tpu.memory_space<vmem>>, vector<1x32xf32>
      %c0_45 = arith.constant 0 : index
      %c0_46 = arith.constant 0 : index
      %88 = vector.load %arg14[%c0_45, %c0_46] : memref<32x32xf32, #tpu.memory_space<vmem>>, vector<32x32xf32>
      %c0_47 = arith.constant 0 : index
      %c0_48 = arith.constant 0 : index
      %89 = vector.load %arg15[%c0_47, %c0_48] : memref<1x32xf32, #tpu.memory_space<vmem>>, vector<1x32xf32>
      %cst_49 = arith.constant dense<0.000000e+00> : vector<2x32xf32>
      %90 = tpu.matmul %83, %84, %cst_49 {dimension_numbers = #tpu.dot_dimension_numbers<[1], [0], [0], [1], [0, 0, 1, 1], [], []>} : vector<2x32xf32>, vector<32x32xf32>, vector<2x32xf32> -> vector<2x32xf32>
      %91 = vector.broadcast %85 : vector<1x32xf32> to vector<2x32xf32>
      %92 = arith.addf %90, %91 : vector<2x32xf32>
      %cst_50 = arith.constant dense<0.000000e+00> : vector<32xf32>
      %93 = vector.multi_reduction <add>, %92, %cst_50 [0] : vector<2x32xf32> to vector<32xf32>
      %94 = vector.shape_cast %93 : vector<32xf32> to vector<1x32xf32>
      %cst_51 = arith.constant 2.000000e+00 : f32
      %95 = vector.broadcast %cst_51 : f32 to vector<1x32xf32>
      %96 = arith.divf %94, %95 : vector<1x32xf32>
      %97 = vector.broadcast %96 : vector<1x32xf32> to vector<2x32xf32>
      %98 = arith.subf %92, %97 : vector<2x32xf32>
      %99 = arith.mulf %98, %98 : vector<2x32xf32>
      %cst_52 = arith.constant dense<0.000000e+00> : vector<32xf32>
      %100 = vector.multi_reduction <add>, %99, %cst_52 [0] : vector<2x32xf32> to vector<32xf32>
      %101 = vector.shape_cast %100 : vector<32xf32> to vector<1x32xf32>
      %cst_53 = arith.constant 2.000000e+00 : f32
      %102 = vector.broadcast %cst_53 : f32 to vector<1x32xf32>
      %103 = arith.divf %101, %102 : vector<1x32xf32>
      %cst_54 = arith.constant 9.99999974E-6 : f32
      %104 = vector.broadcast %cst_54 : f32 to vector<1x32xf32>
      %105 = arith.addf %103, %104 : vector<1x32xf32>
      %106 = math.rsqrt %105 : vector<1x32xf32>
      %107 = vector.broadcast %106 : vector<1x32xf32> to vector<2x32xf32>
      %108 = arith.mulf %98, %107 : vector<2x32xf32>
      %109 = vector.broadcast %86 : vector<1x32xf32> to vector<2x32xf32>
      %110 = arith.mulf %108, %109 : vector<2x32xf32>
      %111 = vector.broadcast %87 : vector<1x32xf32> to vector<2x32xf32>
      %112 = arith.addf %110, %111 : vector<2x32xf32>
      %cst_55 = arith.constant 0.000000e+00 : f32
      %113 = vector.broadcast %cst_55 : f32 to vector<2x32xf32>
      %114 = arith.maximumf %112, %113 : vector<2x32xf32>
      %cst_56 = arith.constant dense<0.000000e+00> : vector<2x32xf32>
      %115 = tpu.matmul %114, %88, %cst_56 {dimension_numbers = #tpu.dot_dimension_numbers<[1], [0], [0], [1], [0, 0, 1, 1], [], []>} : vector<2x32xf32>, vector<32x32xf32>, vector<2x32xf32> -> vector<2x32xf32>
      %116 = vector.broadcast %89 : vector<1x32xf32> to vector<2x32xf32>
      %117 = arith.addf %115, %116 : vector<2x32xf32>
      %c0_57 = arith.constant 0 : index
      %c0_58 = arith.constant 0 : index
      %118 = vector.load %arg16[%c0_57, %c0_58] : memref<2x32xf32, #tpu.memory_space<vmem>>, vector<2x32xf32>
      tpu.vector_store %arg16[%c0_57, %c0_58], %117 {strides = array<i32>} : memref<2x32xf32, #tpu.memory_space<vmem>>, vector<2x32xf32>,
    } else {
    }
    return
  }
  func.func @transform_0(%arg0: i32) -> (i32, i32, i32) {
    %c0_i32 = arith.constant 0 : i32
    %c0_i32_0 = arith.constant 0 : i32
    %c0_i32_1 = arith.constant 0 : i32
    return %c0_i32, %c0_i32_0, %arg0 : i32, i32, i32
  }
  func.func @transform_1(%arg0: i32) -> (i32, i32) {
    %c0_i32 = arith.constant 0 : i32
    %c0_i32_0 = arith.constant 0 : i32
    %c0_i32_1 = arith.constant 0 : i32
    return %c0_i32, %c0_i32_0 : i32, i32
  }
  func.func @transform_2(%arg0: i32) -> (i32, i32) {
    %c0_i32 = arith.constant 0 : i32
    %c0_i32_0 = arith.constant 0 : i32
    %c0_i32_1 = arith.constant 0 : i32
    return %c0_i32, %c0_i32_0 : i32, i32
  }
  func.func @transform_3(%arg0: i32) -> (i32, i32) {
    %c0_i32 = arith.constant 0 : i32
    %c0_i32_0 = arith.constant 0 : i32
    %c0_i32_1 = arith.constant 0 : i32
    return %c0_i32, %c0_i32_0 : i32, i32
  }
  func.func @transform_4(%arg0: i32) -> (i32, i32) {
    %c0_i32 = arith.constant 0 : i32
    %c0_i32_0 = arith.constant 0 : i32
    %c0_i32_1 = arith.constant 0 : i32
    return %c0_i32, %c0_i32_0 : i32, i32
  }
  func.func @transform_5(%arg0: i32) -> (i32, i32) {
    %c0_i32 = arith.constant 0 : i32
    %c0_i32_0 = arith.constant 0 : i32
    %c0_i32_1 = arith.constant 0 : i32
    return %c0_i32, %c0_i32_0 : i32, i32
  }
  func.func @transform_6(%arg0: i32) -> (i32, i32) {
    %c0_i32 = arith.constant 0 : i32
    %c0_i32_0 = arith.constant 0 : i32
    %c0_i32_1 = arith.constant 0 : i32
    return %c0_i32, %c0_i32_0 : i32, i32
  }
  func.func @transform_7(%arg0: i32) -> (i32, i32) {
    %c0_i32 = arith.constant 0 : i32
    %c0_i32_0 = arith.constant 0 : i32
    %c0_i32_1 = arith.constant 0 : i32
    return %c0_i32, %c0_i32_0 : i32, i32
  }
  func.func @transform_8(%arg0: i32) -> (i32, i32) {
    %c0_i32 = arith.constant 0 : i32
    %c0_i32_0 = arith.constant 0 : i32
    %c0_i32_1 = arith.constant 0 : i32
    return %c0_i32, %c0_i32_0 : i32, i32
  }
  func.func @transform_9(%arg0: i32) -> (i32, i32) {
    %c0_i32 = arith.constant 0 : i32
    %c0_i32_0 = arith.constant 0 : i32
    %c0_i32_1 = arith.constant 0 : i32
    return %c0_i32, %c0_i32_0 : i32, i32
  }
  func.func @transform_10(%arg0: i32) -> (i32, i32) {
    %c0_i32 = arith.constant 0 : i32
    %c0_i32_0 = arith.constant 0 : i32
    %c0_i32_1 = arith.constant 0 : i32
    return %c0_i32, %c0_i32_0 : i32, i32
  }
  func.func @transform_11(%arg0: i32) -> (i32, i32) {
    %c0_i32 = arith.constant 0 : i32
    %c0_i32_0 = arith.constant 0 : i32
    %c0_i32_1 = arith.constant 0 : i32
    return %c0_i32, %c0_i32_0 : i32, i32
  }
  func.func @transform_12(%arg0: i32) -> (i32, i32) {
    %c0_i32 = arith.constant 0 : i32
    %c0_i32_0 = arith.constant 0 : i32
    %c0_i32_1 = arith.constant 0 : i32
    return %c0_i32, %c0_i32_0 : i32, i32
  }
  func.func @transform_13(%arg0: i32) -> (i32, i32) {
    %c0_i32 = arith.constant 0 : i32
    %c0_i32_0 = arith.constant 0 : i32
    %c0_i32_1 = arith.constant 0 : i32
    return %c0_i32, %c0_i32_0 : i32, i32
  }
  func.func @transform_14(%arg0: i32) -> (i32, i32) {
    %c0_i32 = arith.constant 0 : i32
    %c0_i32_0 = arith.constant 0 : i32
    %c0_i32_1 = arith.constant 0 : i32
    return %c0_i32, %c0_i32_0 : i32, i32
  }
  func.func @transform_15(%arg0: i32) -> (i32, i32) {
    %c0_i32 = arith.constant 0 : i32
    %c0_i32_0 = arith.constant 0 : i32
    %c0_i32_1 = arith.constant 0 : i32
    return %c0_i32, %c0_i32_0 : i32, i32
  }
}

</mosaic_0001>

<bundles_post_ra>
// kernel: tpu_custom_call.1
= control target key start
LH: loop header
LB: loop body
LE: loop exit
PB: predicated region body
PF: predicated region fallthrough
CT: control target
= control target key end

     0   :  { %s1703_s0 = inlined_call_operand.hbm [shape: f32[2,4,256], index: 0, kind: input, shape index: {}]   ;;  %s1704_s1 = inlined_call_operand.vmem [shape: f32[32,4], index: 1, kind: input, shape index: {}]   ;;  %s1705_s2 = inlined_call_operand.vmem [shape: f32[32,1], index: 2, kind: input, shape index: {}]   ;;  %s1706_s3 = inlined_call_operand.vmem [shape: f32[32,32], index: 3, kind: input, shape index: {}]   ;;  %s1707_s4 = inlined_call_operand.vmem [shape: f32[1,32], index: 4, kind: input, shape index: {}]   ;;  %s1708_s5 = inlined_call_operand.vmem [shape: f32[1,32], index: 5, kind: input, shape index: {}]   ;;  %s1709_s6 = inlined_call_operand.vmem [shape: f32[1,32], index: 6, kind: input, shape index: {}]   ;;  %s1710_s7 = inlined_call_operand.vmem [shape: f32[32,32], index: 7, kind: input, shape index: {}]   ;;  %s1711_s8 = inlined_call_operand.vmem [shape: f32[1,32], index: 8, kind: input, shape index: {}]   ;;  %s1712_s9 = inlined_call_operand.hbm [shape: f32[32,32], index: 9, kind: input, shape index: {}]   ;;  %s1713_s10 = inlined_call_operand.vmem [shape: f32[1,32], index: 10, kind: input, shape index: {}]   ;;  %s1714_s11 = inlined_call_operand.vmem [shape: f32[1,32], index: 11, kind: input, shape index: {}]   ;;  %s1715_s12 = inlined_call_operand.vmem [shape: f32[1,32], index: 12, kind: input, shape index: {}]   ;;  %s1716_s13 = inlined_call_operand.hbm [shape: f32[32,32], index: 13, kind: input, shape index: {}]   ;;  %s1717_s14 = inlined_call_operand.vmem [shape: f32[1,32], index: 14, kind: input, shape index: {}]   ;;  %s1718_s15 = inlined_call_operand.hbm [shape: f32[2,32], index: 15, kind: output, shape index: {}]  }
   0x1   :  { %1720 = sst [smem:[#allocation14_spill]] %s1712_s9 }
   0x2   :  { %1721 = sst [smem:[#allocation15_spill]] %s1715_s12 }
   0x3   :  { %1722 = sst [smem:[#allocation16_spill]] %s1716_s13 }
   0x4   :  { %1723 = sst [smem:[#allocation17_spill]] %s1717_s14 }
   0x5   :  { %1724 = sst [smem:[#allocation18_spill]] %s1718_s15 }
   0x6   :  { %20 = vsyncpa [#allocation4], 0 }
   0x7   :  { %22 = vsyncpa [#allocation4 + $0x1], 0 }
   0x8   :  { %23 = vsyncpa [#allocation7], 0 }
   0x9   :  { %24 = vsyncpa [#allocation5], 0  ;;  %s1458_s18 = smov 0   ;;  %s1460_s19 = smov 0  }
   0xa   :  { %s1462_s20 = smov 0   ;;  %s1464_s21 = smov 0  }
   0xb LB: > { %s1477_s22 = sadd.s32 4294967295, %s1363_s21   ;;  %p50_p0 = scmp.ne.s32.totalorder %s1355_s19, %s1351_s18  ;;  %s1363_s21 = sphi %s1464_s21, %s1739_s21   ;;  %s1359_s20 = sphi %s1462_s20, %s1738_s20   ;;  %s1355_s19 = sphi %s1460_s19, %s1737_s19   ;;  %s1351_s18 = sphi %s1458_s18, %s1736_s18  }
   0xc   : > { %p51_p1 = scmp.eq.s32.totalorder %s1477_s22, 0  ;;  %p1080_p2 = scmp.ge.s32.totalorder %s1363_s21, 1 }
   0xd   : > { %p376_p3 = scmp.lt.s32.totalorder %s1363_s21, 3  ;;  %p1081_p4 = scmp.ne.s32.totalorder %s1477_s22, 0 }
   0xe   : > { %p1486_p5 = por %p51_p1, %p50_p0  ;;  %s1726_s9 = sld [smem:[#allocation14_spill]] }
   0xf   : > { %p1493_p6 = pnand %p1080_p2, %p376_p3  ;;  %s1365_s28 = smov [#allocation6]  }
  0x10   : > { %s413_s29 = sshll.u32 %s1365_s28, 4  ;;  %s1728_s13 = sld [smem:[#allocation16_spill]]  ;;  %s414_s29 = int_to_ptr.vmem [resolvable:$true] %s413_s29 }
  0x11   : > { %p1114_p7 = pneg %p1493_p6  ;;  %s1719_s18 = smov 128  }
  0x12   : > { %s1367_s24 = smov 8   ;;  %s1368_s25 = smov [#allocation8]  }
  0x13   : > { %p1115_p8 = pnand %p1114_p7, %p51_p1  ;;  %s436_s28 = sshll.u32 %s1368_s25, 4  ;;  %s437_s28 = int_to_ptr.vmem [resolvable:$true] %s436_s28 }
  0x14   : > { %s411_s26 = sshll.u32 %s1726_s9, 4  ;;  %s1509_s9 = sadd.s32 1, %s1363_s21   ;;  %s412_s26 = int_to_ptr.hbm [resolvable:$true] %s411_s26 }
  0x15   : > { %1117 = dma.hbm_to_vmem [thread:$0]  (!%p1115_p8), %s412_s26, 512, %s414_s29, [#allocation7], %s1719_s18, %s1719_s18, %s1367_s24  }
  0x16   : > { %s434_s17 = sshll.u32 %s1728_s13, 4  ;;  %s37_s30 = sadd.s32 1, %s1359_s20  ;;  %s435_s17 = int_to_ptr.hbm [resolvable:$true] %s434_s17 }
  0x17   : > { %1120 = dma.hbm_to_vmem [thread:$0]  (!%p1115_p8), %s435_s17, 512, %s437_s28, [#allocation7], %s1719_s18, %s1719_s18, %s1367_s24  }
  0x18   : > { %s34_s16 = ssub.s32 %s1363_s21, %s1509_s9  ;;  %p44_p9 = scmp.ne.s32.totalorder %s1359_s20, %s1355_s19 }
  0x19   : > { %p35_p10 = scmp.eq.s32.totalorder %s34_s16, 0  ;;  %p45_p11 = scmp.eq.s32.totalorder %s1363_s21, 0 }
  0x1a   : > { %p1127_p12 = scmp.lt.s32.totalorder %s1363_s21, 2  ;;  %s453_s13 = sand.u32 1, %s1359_s20  }
  0x1b   : > { %s1520_s15 = scalar_select %p35_p10, %s1359_s20, %s37_s30  }
  0x1c   : > { %p46_p13 = por %p45_p11, %p44_p9  ;;  %s1084_s26 = sshll.u32 %s453_s13, 3 }
  0x1d   : > { %1729 = sst [smem:[#allocation13_spill]] %s1520_s15  ;;  %s1085_s29 = sshll.u32 %s1363_s21, 2 }
  0x1e   : > { %s461_s12 = scalar_lea.hbm %s1703_s0, %s1085_s29  ;;  %s457_s24 = scalar_lea.vmem [#allocation3], %s1084_s26 }
  0x1f   : > { %s462_s17 = sshll.u32 %s461_s12, 4  ;;  %s464_s28 = sshll.u32 %s457_s24, 4  ;;  %s463_s17 = int_to_ptr.hbm [resolvable:$true] %s462_s17  ;;  %s465_s28 = int_to_ptr.vmem [resolvable:$true] %s464_s28 }
  0x20   : > { %p1526_p0 = pnand %p1127_p12, %p46_p13  ;;  %s454_s16 = scalar_lea.sflag [#allocation4], %s453_s13 }
  0x21   : > { %s1263_s30 = sshra.s32 %s463_s17, 4  ;;  %s1270_s21 = scalar_lea.hbm %s1703_s0, 16  ;;  %s1264_s30 = int_to_ptr.hbm [resolvable:$true] %s1263_s30 }
  0x22   : > { %s1265_s15 = scalar_lea.hbm %s1264_s30, 8  ;;  %p1267_p3 = pneg %p1526_p0 }
  0x23   : > { %p1266_p2 = scmp.ne.s32.totalorder %s1264_s30, %s1265_s15  ;;  %p1271_p9 = scmp.lt.s32.totalorder %s1264_s30, %s1703_s0 }
  0x24   : > { %p1272_p10 = scmp.lt.s32.totalorder %s1270_s21, %s1265_s15 }
  0x25   : > { %p1268_p7 = pnand %p1267_p3, %p1266_p2 }
  0x26   : > { %p1273_p11 = por %p1272_p10, %p1271_p9 }
  0x27   : > { %p1269_p8 = pneg %p1268_p7 }
  0x29   : > { %p1274_p12 = pnand %p1273_p11, %p1269_p8 }
  0x2b   : > { %1277 = shalt.err (!%p1274_p12)
}
  0x2c   : > { %s1369_s13 = smov 64   ;;  %s1370_s25 = smov 4  }
  0x2d   : > { %s1731_s24 = smov 128   ;;  %476 = sbr.rel (%p1493_p6) target bundleno = 1043 (0x413), region = 80 }
  0x2e   : > { %1124 = dma.hbm_to_vmem [thread:$0]  (!%p1526_p0), %s463_s17, 128, %s465_s28, %s454_s16, %s1731_s24, %s1369_s13, %s1370_s25  }
  0x2f   : > { %s478_s14 = sand.u32 (!%p1493_p6), 1, %s1355_s19  }
  0x30   : > { %s1544_s12 = sshll.u32 (!%p1493_p6), %s478_s14, 3  ;;  %s479_s30 = scalar_lea.sflag (!%p1493_p6), [#allocation4], %s478_s14 }
  0x31   : > { %s482_s15 = scalar_lea.vmem (!%p1493_p6), [#allocation3], %s1544_s12 }
  0x32   : > { %1338 = dma.done.wait (%p1486_p5), %s479_s30, 128  }
  0x33   : > { %1340 = vsyncadd (%p1486_p5), %s479_s30, 4294967168 }
  0x34   : > { %1342 = dma.done.wait (%p51_p1), [#allocation7], 1024  }
  0x35   : > { %1344 = vsyncadd (%p51_p1), [#allocation7], 4294966272  ;;  %538 = sbr.rel (%p1081_p4) target bundleno = 60 (0x3c), region = 96 }
  0x3a   : > { %vm539_vm0 = vcmask 254976   ;;  %v1371_v0 = vmov 0.0  }
  0x3b   : > { %540 = vst.msk [vmem:[#allocation2] sm:$0x3] %vm539_vm0, %v1371_v0 }
  0x3c PF: > { %v545_v1 = vld [vmem:[%s1704_s1 + $0x10] sm:$0xff]  ;;  %v543_v2 = vld [vmem:[%s1704_s1] sm:$0xff]  ;;  %v1372_v3 = vmov 1   ;;  %v1373_v4 = vmov 0   ;;  %v546_v5 = vld [vmem:[%s1704_s1 + $0x18] sm:$0xff]  ;;  %v1374_v7 = vmov 2  }
  0x3d   : > { %1179 = vset.pattern.permute.xlu0 %v1372_v3  ;;  %1177 = vset.pattern.permute.xlu1 %v1373_v4  ;;  %v544_v6 = vld [vmem:[%s1704_s1 + $0x8] sm:$0xff]  ;;  %v547_v8 = vld [vmem:[%s1705_s2] sm:$0xff]  ;;  %v1375_v9 = vmov 3   ;;  %v549_v11 = vld [vmem:[%s1705_s2 + $0x10] sm:$0xff]  ;;  %vm757_vm1 = vcmask 130112   ;;  %vm761_vm2 = vcmask 195712  }
  0x3e   : > { %1178 = vset.pattern.permute.xlu2 %v1372_v3  ;;  %598 = vperm.xlu0 %1179, %v545_v1   ;;  %v548_v10 = vld [vmem:[%s1705_s2 + $0x8] sm:$0xff]  ;;  %v550_v12 = vld [vmem:[%s1705_s2 + $0x18] sm:$0xff]  ;;  %vm765_vm3 = vcmask 261312   ;;  %vm774_vm4 = vcmask 1041409   ;;  %vm778_vm5 = vcmask 254976   ;;  %p1091_p1 = scmp.ne.s32.totalorder %s1477_s22, 1 }
  0x3f   : > { %563 = vperm.xlu1 %1177, %v545_v1   ;;  %590 = vperm.xlu2 %1178, %v543_v2   ;;  %v541_v22 = vld [vmem:[%s482_s15] sm:$0xf]  ;;  %v542_v23 = vld [vmem:[%s482_s15 + $0x4] sm:$0xf]  ;;  %s1732_s27 = sld [smem:[#allocation15_spill]] (!%p1091_p1) }
  0x40   : > { %v571_v24 = vperm.slane %v541_v22, 0  ;;  %v1591_v25 = vperm.slane %v542_v23, 0  ;;  %v605_v27 = vperm.slane %v541_v22, 1  ;;  %v1593_v28 = vperm.slane %v542_v23, 1  ;;  %s1733_s15 = sld [smem:[#allocation17_spill]] (!%p1091_p1) }
  0x41   : > { %v639_v34 = vperm.slane %v541_v22, 2  ;;  %v1597_v35 = vperm.slane %v542_v23, 2  ;;  %v673_v41 = vperm.slane %v541_v22, 3  ;;  %v1600_v42 = vperm.slane %v542_v23, 3 }
  0x46   : > { %1183 = vset.pattern.permute.xlu0 %v1374_v7 }
  0x47   : > { %568 = vperm.xlu1 %1177, %v546_v5   ;;  %636 = vperm.xlu0 %1183, %v546_v5  }
  0x48   : > { %594 = vperm.xlu2 %1178, %v544_v6  }
  0x4f   : > { %1180 = vset.pattern.permute.xlu1 %v1372_v3  ;;  %1184 = vset.pattern.permute.xlu0 %v1373_v4 }
  0x50   : > { %602 = vperm.xlu1 %1180, %v546_v5   ;;  %1181 = vset.pattern.permute.xlu2 %v1374_v7 }
  0x51   : > { %553 = vperm.xlu0 %1184, %v543_v2   ;;  %624 = vperm.xlu2 %1181, %v543_v2  }
  0x58   : > { %1182 = vset.pattern.permute.xlu1 %v1374_v7 }
  0x59   : > { %628 = vperm.xlu1 %1182, %v544_v6   ;;  %558 = vperm.xlu0 %1184, %v544_v6  }
  0x5a   : > { %632 = vperm.xlu2 %1181, %v545_v1  }
  0x61   : > { %1185 = vset.pattern.permute.xlu1 %v1375_v9  ;;  %693 = vperm.xlu0 %1184, %v547_v8  }
  0x62   : > { %658 = vperm.xlu1 %1185, %v543_v2   ;;  %1186 = vset.pattern.permute.xlu2 %v1375_v9 }
  0x63   : > { %662 = vperm.xlu2 %1186, %v544_v6  }
  0x6a   : > { %666 = vperm.xlu1 %1185, %v545_v1  }
  0x6b   : > { %670 = vperm.xlu2 %1186, %v546_v5  }
  0x72   : > { %1187 = vset.pattern.permute.xlu1 %v1373_v4 }
  0x73   : > { %698 = vperm.xlu1 %1187, %v548_v10   ;;  %1188 = vset.pattern.permute.xlu2 %v1373_v4 }
  0x74   : > { %703 = vperm.xlu2 %1188, %v549_v11  }
  0x7b   : > { %708 = vperm.xlu1 %1187, %v550_v12  }
  0x99   : > { %v591_v13 = vpop.permute.xlu2 %590 }
  0x9a   : > { %v607_v32 = vmul.f32 %v605_v27, %v591_v13  ;;  %v611_v33 = vmul.f32 %v1593_v28, %v591_v13 }
  0xa2   : > { %v595_v18 = vpop.permute.xlu2 %594 }
  0xa3   : > { %v608_v56 = vmul.f32 %v605_v27, %v595_v18  ;;  %v612_v57 = vmul.f32 %v1593_v28, %v595_v18 }
  0xab   : > { %v625_v21 = vpop.permute.xlu2 %624 }
  0xac   : > { %v641_v37 = vmul.f32 %v639_v34, %v625_v21  ;;  %v645_v38 = vmul.f32 %v1597_v35, %v625_v21 }
  0xb0   : > { %v599_v15 = vpop.permute.xlu0 %598 }
  0xb1   : > { %v564_v14 = vpop.permute.xlu1 %563  ;;  %v613_v63 = vmul.f32 %v1593_v28, %v599_v15  ;;  %v609_v3 = vmul.f32 %v605_v27, %v599_v15 }
  0xb2   : > { %v579_v0 = vmul.f32 %v1591_v25, %v564_v14  ;;  %v575_v4 = vmul.f32 %v571_v24, %v564_v14 }
  0xb4   : > { %v633_v36 = vpop.permute.xlu2 %632  ;;  %v621_v11 = vadd.f32 %v613_v63, %v579_v0  ;;  %v617_v18 = vadd.f32 %v609_v3, %v575_v4 }
  0xb5   : > { %v647_v12 = vmul.f32 %v1597_v35, %v633_v36 }
  0xb9   : > { %v1581_v16 = vpop.permute.xlu1 %568  ;;  %v1583_v17 = vpop.permute.xlu0 %636 }
  0xba   : > { %v576_v13 = vmul.f32 %v571_v24, %v1581_v16  ;;  %v644_v21 = vmul.f32 %v639_v34, %v1583_v17 }
  0xbd   : > { %v663_v48 = vpop.permute.xlu2 %662 }
  0xbe   : > { %v676_v5 = vmul.f32 %v673_v41, %v663_v48  ;;  %v680_v6 = vmul.f32 %v1600_v42, %v663_v48 }
  0xc2   : > { %v1585_v19 = vpop.permute.xlu1 %602 }
  0xc3   : > { %v554_v20 = vpop.permute.xlu0 %553  ;;  %v610_v7 = vmul.f32 %v605_v27, %v1585_v19  ;;  %v655_v27 = vadd.f32 %v647_v12, %v621_v11  ;;  %v727_v12 = vld [vmem:[#allocation2] sm:$0x3] }
  0xc4   : > { %v573_v29 = vmul.f32 %v571_v24, %v554_v20  ;;  %v577_v30 = vmul.f32 %v1591_v25, %v554_v20  ;;  %v643_v20 = vmul.f32 %v639_v34, %v633_v36 }
  0xc5   : > { %v671_v10 = vpop.permute.xlu2 %670  ;;  %v618_v22 = vadd.f32 %v610_v7, %v576_v13 }
  0xc6   : > { %v615_v39 = vadd.f32 %v607_v32, %v573_v29  ;;  %v619_v40 = vadd.f32 %v611_v33, %v577_v30  ;;  %v651_v32 = vadd.f32 %v643_v20, %v617_v18  ;;  %v614_v33 = vmul.f32 %v1593_v28, %v1585_v19 }
  0xc8   : > { %v649_v44 = vadd.f32 %v641_v37, %v615_v39  ;;  %v653_v45 = vadd.f32 %v645_v38, %v619_v40  ;;  %v678_v37 = vmul.f32 %v673_v41, %v671_v10  ;;  %v652_v39 = vadd.f32 %v644_v21, %v618_v22 }
  0xcb   : > { %v629_v26 = vpop.permute.xlu1 %628  ;;  %v559_v31 = vpop.permute.xlu0 %558 }
  0xcc   : > { %v574_v51 = vmul.f32 %v571_v24, %v559_v31  ;;  %v578_v52 = vmul.f32 %v1591_v25, %v559_v31  ;;  %v642_v1 = vmul.f32 %v639_v34, %v629_v26  ;;  %v646_v2 = vmul.f32 %v1597_v35, %v629_v26 }
  0xcd   : > { %v580_v34 = vmul.f32 %v1591_v25, %v1581_v16 }
  0xce   : > { %v616_v60 = vadd.f32 %v608_v56, %v574_v51  ;;  %v620_v61 = vadd.f32 %v612_v57, %v578_v52  ;;  %v704_v40 = vpop.permute.xlu2 %703 }
  0xd0   : > { %v650_v8 = vadd.f32 %v642_v1, %v616_v60  ;;  %v654_v9 = vadd.f32 %v646_v2, %v620_v61 }
  0xd2   : > { %v684_v15 = vadd.f32 %v676_v5, %v650_v8  ;;  %v688_v23 = vadd.f32 %v680_v6, %v654_v9 }
  0xd3   : > { %v694_v53 = vpop.permute.xlu0 %693 }
  0xd4   : > { %v659_v43 = vpop.permute.xlu1 %658 }
  0xd5   : > { %v675_v46 = vmul.f32 %v673_v41, %v659_v43  ;;  %v679_v47 = vmul.f32 %v1600_v42, %v659_v43 }
  0xd7   : > { %v683_v49 = vadd.f32 %v675_v46, %v649_v44  ;;  %v687_v50 = vadd.f32 %v679_v47, %v653_v45  ;;  %v648_v44 = vmul.f32 %v1597_v35, %v1583_v17  ;;  %v622_v45 = vadd.f32 %v614_v33, %v580_v34 }
  0xd8   : > { %v686_v47 = vadd.f32 %v678_v37, %v652_v39 }
  0xd9   : > { %v715_v54 = vadd.f32 %v694_v53, %v687_v50  ;;  %v711_v55 = vadd.f32 %v694_v53, %v683_v49  ;;  %v656_v49 = vadd.f32 %v648_v44, %v622_v45 }
  0xdb   : > { %v723_v58 = vmax.f32 %v715_v54, 0.0  ;;  %v719_v59 = vmax.f32 %v711_v55, 0.0  ;;  %v752_v54 = vlaneseq }
  0xdc   : > { %v667_v62 = vpop.permute.xlu1 %666 }
  0xdd   : > { %736 = vadd.xlane.f32.xlu1 %v723_v58  ;;  %728 = vadd.xlane.f32.xlu2 %v719_v59  ;;  %v681_v14 = vmul.f32 %v1600_v42, %v667_v62  ;;  %v677_v26 = vmul.f32 %v673_v41, %v667_v62  ;;  %v682_v41 = vmul.f32 %v1600_v42, %v671_v10  ;;  %v753_v57 = vand.u32 127, %v752_v54 }
  0xdf   : > { %v689_v24 = vadd.f32 %v681_v14, %v655_v27  ;;  %v685_v43 = vadd.f32 %v677_v26, %v651_v32  ;;  %v690_v16 = vadd.f32 %v682_v41, %v656_v49  ;;  %v755_v58 = vadd.s32 4294967288, %v753_v57 }
  0xe0   : > { %v759_v59 = vadd.s32 4294967280, %v753_v57  ;;  %v763_v61 = vadd.s32 4294967272, %v753_v57 }
  0xe1   : > { %v717_v46 = vadd.f32 %v704_v40, %v689_v24  ;;  %v713_v48 = vadd.f32 %v704_v40, %v685_v43 }
  0xe3   : > { %v725_v51 = vmax.f32 %v717_v46, 0.0  ;;  %v721_v52 = vmax.f32 %v713_v48, 0.0 }
  0xe5   : > { %v699_v29 = vpop.permute.xlu1 %698 }
  0xe6   : > { %v712_v30 = vadd.f32 %v699_v29, %v684_v15  ;;  %v716_v31 = vadd.f32 %v699_v29, %v688_v23 }
  0xe8   : > { %v720_v38 = vmax.f32 %v712_v30, 0.0  ;;  %v724_v36 = vmax.f32 %v716_v31, 0.0 }
  0xea   : > { %730 = vadd.xlane.f32.xlu0 %v720_v38  ;;  %738 = vadd.xlane.f32.xlu2 %v724_v36 }
  0xed   : > { %v709_v19 = vpop.permute.xlu1 %708 }
  0xee   : > { %v714_v28 = vadd.f32 %v709_v19, %v686_v47  ;;  %v718_v25 = vadd.f32 %v709_v19, %v690_v16 }
  0xf0   : > { %v722_v50 = vmax.f32 %v714_v28, 0.0  ;;  %v726_v53 = vmax.f32 %v718_v25, 0.0 }
  0xf2   : > { %734 = vadd.xlane.f32.xlu1 %v722_v50  ;;  %740 = vadd.xlane.f32.xlu0 %v725_v51 }
  0xf3   : > { %732 = vadd.xlane.f32.xlu2 %v721_v52 }
  0xfb   : > { %742 = vadd.xlane.f32.xlu2 %v726_v53 }
 0x150   : > { %v729_v17 = vpop.xlane.xlu2 %728  ;;  %v737_v56 = vpop.xlane.xlu1 %736 }
 0x151   : > { %v754_v1 = vperm.slane %v729_v17, %v753_v57  ;;  %v767_v4 = vperm.slane %v737_v56, %v753_v57 }
 0x15d   : > { %v739_v35 = vpop.xlane.xlu2 %738  ;;  %v731_v55 = vpop.xlane.xlu0 %730 }
 0x15e   : > { %v756_v60 = vperm.slane %v731_v55, %v755_v58  ;;  %v768_v2 = vperm.slane %v739_v35, %v755_v58 }
 0x160   : > { %v758_v5 = vsel %vm757_vm1, %v756_v60, %v754_v1  ;;  %v769_v9 = vsel %vm757_vm1, %v768_v2, %v767_v4 }
 0x165   : > { %v741_v62 = vpop.xlane.xlu0 %740  ;;  %v735_v63 = vpop.xlane.xlu1 %734 }
 0x166   : > { %v733_v42 = vpop.xlane.xlu2 %732  ;;  %v770_v3 = vperm.slane %v741_v62, %v759_v59  ;;  %v764_v6 = vperm.slane %v735_v63, %v763_v61 }
 0x167   : > { %v760_v0 = vperm.slane %v733_v42, %v759_v59 }
 0x168   : > { %v771_v11 = vsel %vm761_vm2, %v770_v3, %v769_v9 }
 0x169   : > { %v762_v7 = vsel %vm761_vm2, %v760_v0, %v758_v5 }
 0x16a   : > { %v766_v13 = vsel %vm765_vm3, %v764_v6, %v762_v7 }
 0x16e   : > { %v743_v8 = vpop.xlane.xlu2 %742 }
 0x16f   : > { %v772_v10 = vperm.slane %v743_v8, %v763_v61 }
 0x171   : > { %v773_v18 = vsel %vm765_vm3, %v772_v10, %v771_v11  ;;  %783 = sbr.rel (%p1091_p1) target bundleno = 1032 (0x408), region = 100 }
 0x172   : > { %v775_v20 = vsel %vm774_vm4, %v773_v18, %v766_v13 }
 0x173   : > { %v777_v21 = vadd.f32 %v775_v20, %v727_v12 }
 0x175   : > { %779 = vst.msk [vmem:[#allocation2] sm:$0x3] %vm778_vm5, %v777_v21 }
 0x176   : > { %v789_v22 = vld [vmem:[%s1706_s3 + $0x18] sm:$0xff]  ;;  %v788_v14 = vld [vmem:[%s1706_s3 + $0x10] sm:$0xff]  ;;  %v787_v23 = vld [vmem:[%s1706_s3 + $0x8] sm:$0xff]  ;;  %vm801_vm6 = vcmask 261120   ;;  %v1376_v27 = vmov 2.0  }
 0x177   : > { %817 = vmatpush.msra.mxu0 %v789_v22  ;;  %v786_v26 = vld [vmem:[%s1706_s3] sm:$0xff]  ;;  %1197 = vrcp.f32 %v1376_v27  ;;  %v796_v51 = vld [vmem:[%s1710_s7 + $0x18] sm:$0xff]  ;;  %v795_v52 = vld [vmem:[%s1710_s7 + $0x10] sm:$0xff] }
 0x178   : > { %v1189_v31 = vld [vmem:[%s1707_s4] ss:$0 sm:$0xff]  ;;  %889 = vmatpush.msra.mxu1 %v796_v51  ;;  %v794_v25 = vld [vmem:[%s1710_s7 + $0x8] sm:$0xff]  ;;  %v897_v8 = vld [vmem:[#allocation6] sm:$0xff] }
 0x179   : > { %818 = vmatpush.msra.mxu0 %v788_v14  ;;  %v793_v17 = vld [vmem:[%s1710_s7] sm:$0xff]  ;;  %v900_v55 = vld [vmem:[#allocation6 + $0x18] sm:$0xff] }
 0x17a   : > { %890 = vmatpush.msra.mxu1 %v795_v52  ;;  %v899_v56 = vld [vmem:[#allocation6 + $0x10] sm:$0xff]  ;;  %927 = vmatpush.msra.mxu2 %v900_v55  ;;  %v1190_v0 = vld [vmem:[%s1708_s5] ss:$0 sm:$0xff] }
 0x17b   : > { %819 = vmatpush.msra.mxu0 %v787_v23  ;;  %v1191_v3 = vld [vmem:[%s1709_s6] ss:$0 sm:$0xff] }
 0x17c   : > { %v784_v15 = vld [vmem:[#allocation2] sm:$0x3]  ;;  %891 = vmatpush.msra.mxu1 %v794_v25  ;;  %928 = vmatpush.msra.mxu2 %v899_v56 }
 0x17d   : > { %v785_v29 = vmul.f32 0.00390625, %v784_v15  ;;  %820 = vmatpush.msra.mxu0 %v786_v26  ;;  %v1198_v30 = vpop.eup %1197  ;;  %v898_v7 = vld [vmem:[#allocation6 + $0x8] sm:$0xff] }
 0x17e   : > { %v833_v32 = vmul.f32 2.0, %v1198_v30  ;;  %vm837_vm7 = vweird.f32 %v1198_v30  ;;  %892 = vmatpush.msra.mxu1 %v793_v17  ;;  %929 = vmatpush.msra.mxu2 %v898_v7  ;;  %v1192_v9 = vld [vmem:[%s1711_s8] ss:$0 sm:$0xff] }
 0x17f   : > { %1092 = vmatmul.msk.f32.vlgmr.msra.gmra.mxu0 %vm801_vm6, %v785_v29  ;;  %v1193_v12 = vld [vmem:[%s1713_s10] ss:$0 sm:$0xff] }
 0x180   : > { %v834_v24 = vsub.f32 1.0, %v833_v32  ;;  %930 = vmatpush.msra.mxu2 %v897_v8  ;;  %v1196_v17 = vld [vmem:[%s1733_s15] ss:$0 sm:$0xff] }
 0x182   : > { %v835_v39 = vmul.f32 %v1198_v30, %v834_v24  ;;  %v906_v24 = vld [vmem:[#allocation8 + $0x10] sm:$0xff] }
 0x184   : > { %v836_v43 = vadd.f32 %v1198_v30, %v835_v39 }
 0x186   : > { %v1640_v46 = vsel %vm837_vm7, %v1198_v30, %v836_v43 }
 0x1fc   : > { %v822_v33 = vpop.f32.mrf.mxu0 }
 0x1fd   : > { %v823_v37 = vadd.f32 %v1189_v31, %v822_v33 }
 0x1ff   : > { %v825_v38 = vsel %vm778_vm5, %v823_v37, 0.0 }
 0x200   : > { %v826_v36 = vrot.slane %v825_v38, 4 }
 0x202   : > { %v827_v34 = vadd.f32 %v826_v36, %v825_v38  ;;  %v905_v36 = vld [vmem:[#allocation8 + $0x8] sm:$0xff] }
 0x204   : > { %v828_v40 = vrot.slane %v827_v34, 2 }
 0x206   : > { %v829_v44 = vadd.f32 %v828_v40, %v827_v34  ;;  %v904_v34 = vld [vmem:[#allocation8] sm:$0xff] }
 0x208   : > { %v830_v45 = vrot.slane %v829_v44, 1 }
 0x20a   : > { %v831_v47 = vadd.f32 %v830_v45, %v829_v44 }
 0x20c   : > { %v839_v48 = vmul.f32 %v1640_v46, %v831_v47 }
 0x20e   : > { %v840_v19 = vsub.f32 %v823_v37, %v839_v48  ;;  %v907_v37 = vld [vmem:[#allocation8 + $0x18] sm:$0xff] }
 0x20f   : > { %992 = vmatpush.msra.mxu3 %v907_v37 }
 0x210   : > { %v841_v28 = vmul.f32 %v840_v19, %v840_v19 }
 0x211   : > { %993 = vmatpush.msra.mxu3 %v906_v24 }
 0x212   : > { %v842_v41 = vsel %vm778_vm5, %v841_v28, 0.0 }
 0x213   : > { %v843_v49 = vrot.slane %v842_v41, 4  ;;  %994 = vmatpush.msra.mxu3 %v905_v36 }
 0x215   : > { %v844_v50 = vadd.f32 %v843_v49, %v842_v41  ;;  %995 = vmatpush.msra.mxu3 %v904_v34 }
 0x217   : > { %v845_v16 = vrot.slane %v844_v50, 2 }
 0x219   : > { %v846_v53 = vadd.f32 %v845_v16, %v844_v50  ;;  %v1194_v50 = vld [vmem:[%s1714_s11] ss:$0 sm:$0xff] }
 0x21b   : > { %v847_v35 = vrot.slane %v846_v53, 1 }
 0x21d   : > { %v848_v54 = vadd.f32 %v847_v35, %v846_v53 }
 0x21f   : > { %v849_v57 = vmul.f32 %v848_v54, %v1640_v46 }
 0x221   : > { %v850_v58 = vadd.f32 1e-05, %v849_v57 }
 0x223   : > { %1199 = vrsqrt.f32 %v850_v58  ;;  %vm857_vm9 = vweird.f32 %v850_v58 }
 0x229   : > { %v1200_v59 = vpop.eup %1199 }
 0x22a   : > { %v852_v42 = vmul.f32 %v1200_v59, %v850_v58  ;;  %vm858_vm8 = vweird.f32 %v1200_v59 }
 0x22b   : > { %vm859_vm10 = vmor %vm857_vm9, %vm858_vm8 }
 0x22c   : > { %v853_v60 = vmul.f32 %v1200_v59, %v852_v42 }
 0x22e   : > { %v854_v61 = vmul.f32 0.5, %v853_v60 }
 0x230   : > { %v855_v62 = vsub.f32 1.5, %v854_v61 }
 0x232   : > { %v856_v63 = vmul.f32 %v1200_v59, %v855_v62 }
 0x234   : > { %v860_v1 = vsel %vm859_vm10, %v1200_v59, %v856_v63 }
 0x235   : > { %v861_v2 = vmul.f32 %v860_v1, %v840_v19 }
 0x237   : > { %v865_v4 = vmul.f32 %v1190_v0, %v861_v2 }
 0x239   : > { %v869_v5 = vadd.f32 %v1191_v3, %v865_v4 }
 0x23b   : > { %v870_v6 = vmax.f32 %v869_v5, 0.0 }
 0x23d   : > { %1093 = vmatmul.msk.f32.vlgmr.msra.gmra.mxu1 %vm801_vm6, %v870_v6 }
 0x2ba   : > { %v894_v10 = vpop.f32.mrf.mxu1 }
 0x2bb   : > { %v895_v11 = vadd.f32 %v1192_v9, %v894_v10 }
 0x2bd   : > { %1094 = vmatmul.msk.f32.vlgmr.msra.gmra.mxu2 %vm801_vm6, %v895_v11 }
 0x340   : > { %v932_v13 = vpop.f32.mrf.mxu2 }
 0x341   : > { %v933_v18 = vadd.f32 %v1193_v12, %v932_v13 }
 0x343   : > { %v935_v20 = vsel %vm778_vm5, %v933_v18, 0.0 }
 0x344   : > { %v936_v21 = vrot.slane %v935_v20, 4 }
 0x346   : > { %v937_v22 = vadd.f32 %v936_v21, %v935_v20 }
 0x348   : > { %v938_v14 = vrot.slane %v937_v22, 2 }
 0x34a   : > { %v939_v15 = vadd.f32 %v938_v14, %v937_v22 }
 0x34c   : > { %v940_v23 = vrot.slane %v939_v15, 1 }
 0x34e   : > { %v941_v26 = vadd.f32 %v940_v23, %v939_v15 }
 0x350   : > { %v942_v29 = vmul.f32 %v941_v26, %v1640_v46 }
 0x352   : > { %v943_v27 = vsub.f32 %v933_v18, %v942_v29 }
 0x354   : > { %v944_v30 = vmul.f32 %v943_v27, %v943_v27 }
 0x356   : > { %v945_v31 = vsel %vm778_vm5, %v944_v30, 0.0 }
 0x357   : > { %v946_v32 = vrot.slane %v945_v31, 4 }
 0x359   : > { %v947_v33 = vadd.f32 %v946_v32, %v945_v31 }
 0x35b   : > { %v948_v38 = vrot.slane %v947_v33, 2 }
 0x35d   : > { %v949_v39 = vadd.f32 %v948_v38, %v947_v33 }
 0x35f   : > { %v950_v40 = vrot.slane %v949_v39, 1 }
 0x361   : > { %v951_v43 = vadd.f32 %v950_v40, %v949_v39 }
 0x363   : > { %v952_v44 = vmul.f32 %v951_v43, %v1640_v46  ;;  %v1195_v46 = vld [vmem:[%s1732_s27] ss:$0 sm:$0xff] }
 0x365   : > { %v953_v45 = vadd.f32 1e-05, %v952_v44 }
 0x367   : > { %1201 = vrsqrt.f32 %v953_v45  ;;  %vm960_vm12 = vweird.f32 %v953_v45 }
 0x36d   : > { %v1202_v47 = vpop.eup %1201 }
 0x36e   : > { %v955_v48 = vmul.f32 %v1202_v47, %v953_v45  ;;  %vm961_vm11 = vweird.f32 %v1202_v47 }
 0x36f   : > { %vm962_vm13 = vmor %vm960_vm12, %vm961_vm11 }
 0x370   : > { %v956_v19 = vmul.f32 %v1202_v47, %v955_v48 }
 0x372   : > { %v957_v28 = vmul.f32 0.5, %v956_v19 }
 0x374   : > { %v958_v41 = vsub.f32 1.5, %v957_v28 }
 0x376   : > { %v959_v49 = vmul.f32 %v1202_v47, %v958_v41 }
 0x378   : > { %v963_v51 = vsel %vm962_vm13, %v1202_v47, %v959_v49 }
 0x379   : > { %v964_v52 = vmul.f32 %v963_v51, %v943_v27 }
 0x37b   : > { %v968_v16 = vmul.f32 %v1194_v50, %v964_v52 }
 0x37d   : > { %v972_v25 = vadd.f32 %v1195_v46, %v968_v16 }
 0x37f   : > { %v973_v53 = vmax.f32 %v972_v25, 0.0 }
 0x381   : > { %1095 = vmatmul.msk.f32.vlgmr.msra.gmra.mxu3 %vm801_vm6, %v973_v53 }
 0x404   : > { %v997_v35 = vpop.f32.mrf.mxu3 }
 0x405   : > { %v998_v54 = vadd.f32 %v1196_v17, %v997_v35 }
 0x407   : > { %1000 = vst.msk [vmem:[#allocation9] sm:$0x3] %vm778_vm5, %v998_v54 }
 0x408 PF: > { %p1130_p4 = scmp.eq.s32.totalorder %s1477_s22, 1  ;;  %s1377_s17 = smov [#allocation9]  }
 0x409   : > { %s1007_s23 = sshll.u32 %s1377_s17, 4  ;;  %s1734_s21 = sld [smem:[#allocation18_spill]]  ;;  %s1008_s23 = int_to_ptr.vmem [resolvable:$true] %s1007_s23 }
 0x40f   : > { %s1009_s26 = sshll.u32 %s1734_s21, 4  ;;  %s1010_s26 = int_to_ptr.hbm [resolvable:$true] %s1009_s26 }
 0x410   : > { %1111 = dma.vmem_to_hbm [thread:$0]  (%p1130_p4), %s1008_s23, 32, %s1010_s26, [#allocation5]  }
 0x411   : > { %1346 = dma.done.wait (%p1130_p4), [#allocation5], 32  }
 0x412   : > { %1348 = vsyncadd (%p1130_p4), [#allocation5], 4294967264 }
 0x413 PF: > { %s1735_s29 = sld [smem:[#allocation13_spill]]  ;;  %p27_p5 = scmp.ge.s32.totalorder %s1509_s9, 4  }
 0x414   : > { %s1736_s18 = smov %s1355_s19  ;;  %s1737_s19 = smov %s1359_s20 }
 0x415   : > { %s1739_s21 = smov %s1509_s9  ;;  %29 = sbr.rel (!%p27_p5) target bundleno = 11 (0xb), region = 133 }
 0x419   : > { %s1738_s20 = smov %s1735_s29 }
 0x41a   :  { %1023 = vsyncpa [#allocation4], 1 }
 0x41b   :  { %1025 = vsyncpa [#allocation4 + $0x1], 1 }
 0x41c   :  { %1026 = vsyncpa [#allocation7], 1 }
 0x41d   :  { %1027 = vsyncpa [#allocation5], 1 }
 0x41e   :  { %1029 = vsyncpa [#allocation5 + $0x1], 1 }

</bundles_post_ra>
